<compile_context>
chip_gen: v6e
topology: v6e:2x2x1
jax: 0.10.0
libtpu: 0.0.40
codegen_flags: <defaults>
</compile_context>

<pallas_src>
import math

import jax
import jax.numpy as jnp
from jax import lax
from jax.experimental import pallas as pl

# ----------------------------- config ---------------------------------------
B = 2            # batch
S = 8            # seq length
D_MODEL = 32
D_KV = 8
N_HEADS = 4
INNER = N_HEADS * D_KV      # 32
D_FF = 64
NUM_BUCKETS = 32
MAX_DISTANCE = 128
EPS = 1e-6
DTYPE = jnp.float32


def _gelu_new(x):
    # transformers "gelu_new" (tanh approximation) used by gated T5 variants.
    return 0.5 * x * (1.0 + jnp.tanh(
        math.sqrt(2.0 / math.pi) * (x + 0.044715 * x * x * x)))


# ----------------------- fused Pallas kernel --------------------------------
def _t5_block_kernel(x_ref, ln1_ref, wqkv_ref, wo_ref, bias_ref,
                     ln2_ref, wi01_ref, woff_ref, out_ref):
    """Fused: rmsnorm -> attention -> residual -> rmsnorm -> gated FF -> residual.

    x_ref:    (B*S, D)          lane-dense activation slab
    ln1_ref:  (1, D)            first RMSNorm weight
    wqkv_ref: (D, 3*INNER)      concatenated q|k|v projection
    wo_ref:   (INNER, D)        attention output projection
    bias_ref: (H*B, S, S)       relative position bias, repeated per batch
    ln2_ref:  (1, D)            second RMSNorm weight
    wi01_ref: (D, 2*D_FF)       concatenated wi_0|wi_1
    woff_ref: (D_FF, D)         FF output projection
    """
    x = x_ref[...]                                            # (B*S, D) f32

    # ---- self-attention sublayer -------------------------------------------
    var = jnp.mean(x * x, axis=-1, keepdims=True)
    xn = x * lax.rsqrt(var + EPS) * ln1_ref[...]              # T5 RMS norm

    # single merged QKV projection: (B*S, 3*INNER)
    qkv = jnp.dot(xn, wqkv_ref[...], preferred_element_type=jnp.float32)

    # Build head-major batched tensors (H*B, S, Dk) from static 2-D slices
    # (avoids any non-trivial in-kernel reshapes/transposes). Index = h*B + b.
    def heads(col_off):
        parts = []
        for h in range(N_HEADS):
            for b in range(B):
                parts.append(qkv[b * S:(b + 1) * S,
                                 col_off + h * D_KV: col_off + (h + 1) * D_KV])
        return jnp.stack(parts, axis=0)                       # (H*B, S, Dk)

    q_hb = heads(0)
    k_hb = heads(INNER)
    v_hb = heads(2 * INNER)

    # scores = q @ k^T (T5 does NOT scale by sqrt(dk)) + relative position bias
    scores = jnp.einsum("bqd,bkd->bqk", q_hb, k_hb,
                        preferred_element_type=jnp.float32)   # (H*B, S, S)
    scores = scores + bias_ref[...]

    # numerically stable softmax; denominator reciprocal goes to the EUP slot
    scores = scores - jnp.max(scores, axis=-1, keepdims=True)
    p = jnp.exp(scores)
    p = p * pl.reciprocal(jnp.sum(p, axis=-1, keepdims=True), approx=True)

    attn = jnp.einsum("bqk,bkd->bqd", p, v_hb,
                      preferred_element_type=jnp.float32)     # (H*B, S, Dk)

    # unshape: (H*B, S, Dk) -> (B*S, INNER) with head-major columns, then a
    # SINGLE output-projection matmul (replaces per-head folds + batch sums).
    rows = []
    for b in range(B):
        rows.append(jnp.concatenate(
            [attn[h * B + b] for h in range(N_HEADS)], axis=-1))   # (S, INNER)
    attn2d = jnp.concatenate(rows, axis=0)                     # (B*S, INNER)
    o = jnp.dot(attn2d, wo_ref[...], preferred_element_type=jnp.float32)

    h1 = x + o                                                # residual

    # ---- feed-forward sublayer ---------------------------------------------
    var2 = jnp.mean(h1 * h1, axis=-1, keepdims=True)
    hn = h1 * lax.rsqrt(var2 + EPS) * ln2_ref[...]

    wi = jnp.dot(hn, wi01_ref[...], preferred_element_type=jnp.float32)  # (B*S, 2*Dff)
    g = _gelu_new(wi[:, :D_FF]) * wi[:, D_FF:]                # gated gelu_new
    ff = jnp.dot(g, woff_ref[...], preferred_element_type=jnp.float32)   # (B*S, D)

    out_ref[...] = (h1 + ff).astype(out_ref.dtype)


# --------------------- relative position bias (JAX glue) --------------------
def _relative_position_bucket(rel_pos, bidirectional=True,
                              num_buckets=NUM_BUCKETS, max_distance=MAX_DISTANCE):
    rel_buckets = jnp.zeros_like(rel_pos)
    if bidirectional:
        num_buckets //= 2
        rel_buckets = rel_buckets + (rel_pos > 0).astype(jnp.int32) * num_buckets
        rel_pos = jnp.abs(rel_pos)
    else:
        rel_pos = -jnp.minimum(rel_pos, jnp.zeros_like(rel_pos))
    max_exact = num_buckets // 2
    is_small = rel_pos < max_exact
    rel_if_large = max_exact + (
        jnp.log(rel_pos.astype(jnp.float32) / max_exact)
        / math.log(max_distance / max_exact) * (num_buckets - max_exact)
    ).astype(jnp.int32)
    rel_if_large = jnp.minimum(rel_if_large, num_buckets - 1)
    rel_buckets = rel_buckets + jnp.where(is_small, rel_pos, rel_if_large)
    return rel_buckets


def compute_position_bias(rel_emb, q_len, k_len):
    ctx = jnp.arange(q_len, dtype=jnp.int32)[:, None]
    mem = jnp.arange(k_len, dtype=jnp.int32)[None, :]
    rel_pos = mem - ctx
    buckets = _relative_position_bucket(rel_pos, bidirectional=True)
    values = rel_emb[buckets]                                 # (S, S, H)
    return jnp.transpose(values, (2, 0, 1))                   # (H, S, S)


# ------------------------------ wrappers -------------------------------------
def prepare_block(params):
    """One-time weight folding + position-bias precompute (hoisted out of forward)."""
    bias = compute_position_bias(params["rel_emb"], S, S)     # (H, S, S)
    prepped = {
        "ln1": params["ln1"],                                                   # (1, D)
        "wqkv": jnp.concatenate([params["wq"], params["wk"], params["wv"]], 1),  # (D, 3*INNER)
        "wo": params["wo"],                                                      # (INNER, D)
        "bias_hb": jnp.repeat(bias, B, axis=0),               # (H*B, S, S), idx h*B+b
        "ln2": params["ln2"],                                                   # (1, D)
        "wi01": jnp.concatenate([params["wi0"], params["wi1"]], 1),             # (D, 2*Dff)
        "wo_ff": params["wo_ff"],                                               # (Dff, D)
    }
    return prepped, bias


def t5_block(x, prepped, position_bias):
    """T5Block.forward (encoder). Returns (hidden, position_bias) like PyTorch."""
    x2 = x.reshape(B * S, D_MODEL)        # lane-dense 2-D slab (XLA-side, free)
    out2 = pl.pallas_call(
        _t5_block_kernel,
        out_shape=jax.ShapeDtypeStruct((B * S, D_MODEL), x.dtype),
    )(x2, prepped["ln1"], prepped["wqkv"], prepped["wo"], prepped["bias_hb"],
      prepped["ln2"], prepped["wi01"], prepped["wo_ff"])
    return out2.reshape(B, S, D_MODEL), position_bias[None]   # (1, H, S, S)


# --------------------------- pure-JAX reference ------------------------------
def t5_block_ref(x, params):
    def rms(x, w):
        var = jnp.mean(x * x, -1, keepdims=True)
        return x * lax.rsqrt(var + EPS) * w[0]

    bias = compute_position_bias(params["rel_emb"], S, S)
    xn = rms(x, params["ln1"])
    q = (xn @ params["wq"]).reshape(B, S, N_HEADS, D_KV).transpose(0, 2, 1, 3)
    k = (xn @ params["wk"]).reshape(B, S, N_HEADS, D_KV).transpose(0, 2, 1, 3)
    v = (xn @ params["wv"]).reshape(B, S, N_HEADS, D_KV).transpose(0, 2, 1, 3)
    scores = jnp.einsum("bhqd,bhkd->bhqk", q, k) + bias[None]
    p = jax.nn.softmax(scores, axis=-1)
    o = jnp.einsum("bhqk,bhkd->bhqd", p, v).transpose(0, 2, 1, 3).reshape(B, S, INNER)
    h = x + o @ params["wo"]
    xn2 = rms(h, params["ln2"])
    ff = (_gelu_new(xn2 @ params["wi0"]) * (xn2 @ params["wi1"])) @ params["wo_ff"]
    return h + ff


# ------------------------------- main ----------------------------------------
def init_params(key):
    ks = jax.random.split(key, 9)
    s = 0.05
    return {
        "ln1": jnp.ones((1, D_MODEL), DTYPE),
        "wq": jax.random.normal(ks[0], (D_MODEL, INNER), DTYPE) * s,
        "wk": jax.random.normal(ks[1], (D_MODEL, INNER), DTYPE) * s,
        "wv": jax.random.normal(ks[2], (D_MODEL, INNER), DTYPE) * s,
        "wo": jax.random.normal(ks[3], (INNER, D_MODEL), DTYPE) * s,
        "rel_emb": jax.random.normal(ks[4], (NUM_BUCKETS, N_HEADS), DTYPE) * s,
        "ln2": jnp.ones((1, D_MODEL), DTYPE),
        "wi0": jax.random.normal(ks[5], (D_MODEL, D_FF), DTYPE) * s,
        "wi1": jax.random.normal(ks[6], (D_MODEL, D_FF), DTYPE) * s,
        "wo_ff": jax.random.normal(ks[7], (D_FF, D_MODEL), DTYPE) * s,
    }


if __name__ == "__main__":
    key = jax.random.PRNGKey(0)
    pkey, xkey = jax.random.split(key)
    params = init_params(pkey)
    x = jax.random.normal(xkey, (B, S, D_MODEL), DTYPE)

    prepped, pos_bias = prepare_block(params)   # hoisted: bias + weight folding once

    out, pos_bias_out = t5_block(x, prepped, pos_bias)
    out = jax.block_until_ready(out)
    pos_bias_out = jax.block_until_ready(pos_bias_out)

    ref = t5_block_ref(x, params)
    assert out.shape == (B, S, D_MODEL)
    assert pos_bias_out.shape == (1, N_HEADS, S, S)
    # tolerance accounts for pl.reciprocal(approx=True) in the softmax denominator
    assert jnp.allclose(out, ref, atol=2e-3, rtol=2e-3), "mismatch vs reference"

    print("KERNEL_OK")
</pallas_src>

<mosaic_0001>
module attributes {stable_mosaic.version = 11 : i64} {
  func.func @_t5_block_kernel(%arg0: memref<16x32xf32, #tpu.memory_space<vmem>>, %arg1: memref<1x32xf32, #tpu.memory_space<vmem>>, %arg2: memref<32x96xf32, #tpu.memory_space<vmem>>, %arg3: memref<32x32xf32, #tpu.memory_space<vmem>>, %arg4: memref<8x8x8xf32, #tpu.memory_space<vmem>>, %arg5: memref<1x32xf32, #tpu.memory_space<vmem>>, %arg6: memref<32x128xf32, #tpu.memory_space<vmem>>, %arg7: memref<64x32xf32, #tpu.memory_space<vmem>>, %arg8: memref<16x32xf32, #tpu.memory_space<vmem>>) attributes {dimension_semantics = [], scalar_prefetch = 0 : i64, scratch_operands = 0 : i64, tpu.core_type = #tpu.core_type<tc>} {
    %c0 = arith.constant 0 : index
    %c0_0 = arith.constant 0 : index
    %0 = vector.load %arg0[%c0, %c0_0] : memref<16x32xf32, #tpu.memory_space<vmem>>, vector<16x32xf32>
    %1 = arith.mulf %0, %0 : vector<16x32xf32>
    %cst = arith.constant dense<0.000000e+00> : vector<16xf32>
    %2 = vector.multi_reduction <add>, %1, %cst [1] : vector<16x32xf32> to vector<16xf32>
    %3 = vector.shape_cast %2 : vector<16xf32> to vector<16x1xf32>
    %cst_1 = arith.constant 3.200000e+01 : f32
    %4 = vector.broadcast %cst_1 : f32 to vector<16x1xf32>
    %5 = arith.divf %3, %4 : vector<16x1xf32>
    %cst_2 = arith.constant 9.99999997E-7 : f32
    %6 = vector.broadcast %cst_2 : f32 to vector<16x1xf32>
    %7 = arith.addf %5, %6 : vector<16x1xf32>
    %8 = math.rsqrt %7 : vector<16x1xf32>
    %9 = vector.broadcast %8 : vector<16x1xf32> to vector<16x32xf32>
    %10 = arith.mulf %0, %9 : vector<16x32xf32>
    %c0_3 = arith.constant 0 : index
    %c0_4 = arith.constant 0 : index
    %11 = vector.load %arg1[%c0_3, %c0_4] : memref<1x32xf32, #tpu.memory_space<vmem>>, vector<1x32xf32>
    %12 = vector.broadcast %11 : vector<1x32xf32> to vector<16x32xf32>
    %13 = arith.mulf %10, %12 : vector<16x32xf32>
    %c0_5 = arith.constant 0 : index
    %c0_6 = arith.constant 0 : index
    %14 = vector.load %arg2[%c0_5, %c0_6] : memref<32x96xf32, #tpu.memory_space<vmem>>, vector<32x96xf32>
    %cst_7 = arith.constant dense<0.000000e+00> : vector<16x96xf32>
    %15 = tpu.matmul %13, %14, %cst_7 {dimension_numbers = #tpu.dot_dimension_numbers<[1], [0], [0], [1], [0, 0, 1, 1], [], []>} : vector<16x32xf32>, vector<32x96xf32>, vector<16x96xf32> -> vector<16x96xf32>
    %16 = vector.extract_strided_slice %15 {offsets = [0, 0], sizes = [8, 8], strides = [1, 1]} : vector<16x96xf32> to vector<8x8xf32>
    %17 = vector.extract_strided_slice %15 {offsets = [8, 0], sizes = [8, 8], strides = [1, 1]} : vector<16x96xf32> to vector<8x8xf32>
    %18 = vector.extract_strided_slice %15 {offsets = [0, 8], sizes = [8, 8], strides = [1, 1]} : vector<16x96xf32> to vector<8x8xf32>
    %19 = vector.extract_strided_slice %15 {offsets = [8, 8], sizes = [8, 8], strides = [1, 1]} : vector<16x96xf32> to vector<8x8xf32>
    %20 = vector.extract_strided_slice %15 {offsets = [0, 16], sizes = [8, 8], strides = [1, 1]} : vector<16x96xf32> to vector<8x8xf32>
    %21 = vector.extract_strided_slice %15 {offsets = [8, 16], sizes = [8, 8], strides = [1, 1]} : vector<16x96xf32> to vector<8x8xf32>
    %22 = vector.extract_strided_slice %15 {offsets = [0, 24], sizes = [8, 8], strides = [1, 1]} : vector<16x96xf32> to vector<8x8xf32>
    %23 = vector.extract_strided_slice %15 {offsets = [8, 24], sizes = [8, 8], strides = [1, 1]} : vector<16x96xf32> to vector<8x8xf32>
    %24 = vector.shape_cast %16 : vector<8x8xf32> to vector<1x8x8xf32>
    %25 = vector.shape_cast %17 : vector<8x8xf32> to vector<1x8x8xf32>
    %26 = vector.shape_cast %18 : vector<8x8xf32> to vector<1x8x8xf32>
    %27 = vector.shape_cast %19 : vector<8x8xf32> to vector<1x8x8xf32>
    %28 = vector.shape_cast %20 : vector<8x8xf32> to vector<1x8x8xf32>
    %29 = vector.shape_cast %21 : vector<8x8xf32> to vector<1x8x8xf32>
    %30 = vector.shape_cast %22 : vector<8x8xf32> to vector<1x8x8xf32>
    %31 = vector.shape_cast %23 : vector<8x8xf32> to vector<1x8x8xf32>
    %32 = tpu.concatenate %24, %25, %26, %27, %28, %29, %30, %31 in 0 : vector<1x8x8xf32>, vector<1x8x8xf32>, vector<1x8x8xf32>, vector<1x8x8xf32>, vector<1x8x8xf32>, vector<1x8x8xf32>, vector<1x8x8xf32>, vector<1x8x8xf32> -> vector<8x8x8xf32>
    %33 = vector.extract_strided_slice %15 {offsets = [0, 32], sizes = [8, 8], strides = [1, 1]} : vector<16x96xf32> to vector<8x8xf32>
    %34 = vector.extract_strided_slice %15 {offsets = [8, 32], sizes = [8, 8], strides = [1, 1]} : vector<16x96xf32> to vector<8x8xf32>
    %35 = vector.extract_strided_slice %15 {offsets = [0, 40], sizes = [8, 8], strides = [1, 1]} : vector<16x96xf32> to vector<8x8xf32>
    %36 = vector.extract_strided_slice %15 {offsets = [8, 40], sizes = [8, 8], strides = [1, 1]} : vector<16x96xf32> to vector<8x8xf32>
    %37 = vector.extract_strided_slice %15 {offsets = [0, 48], sizes = [8, 8], strides = [1, 1]} : vector<16x96xf32> to vector<8x8xf32>
    %38 = vector.extract_strided_slice %15 {offsets = [8, 48], sizes = [8, 8], strides = [1, 1]} : vector<16x96xf32> to vector<8x8xf32>
    %39 = vector.extract_strided_slice %15 {offsets = [0, 56], sizes = [8, 8], strides = [1, 1]} : vector<16x96xf32> to vector<8x8xf32>
    %40 = vector.extract_strided_slice %15 {offsets = [8, 56], sizes = [8, 8], strides = [1, 1]} : vector<16x96xf32> to vector<8x8xf32>
    %41 = vector.shape_cast %33 : vector<8x8xf32> to vector<1x8x8xf32>
    %42 = vector.shape_cast %34 : vector<8x8xf32> to vector<1x8x8xf32>
    %43 = vector.shape_cast %35 : vector<8x8xf32> to vector<1x8x8xf32>
    %44 = vector.shape_cast %36 : vector<8x8xf32> to vector<1x8x8xf32>
    %45 = vector.shape_cast %37 : vector<8x8xf32> to vector<1x8x8xf32>
    %46 = vector.shape_cast %38 : vector<8x8xf32> to vector<1x8x8xf32>
    %47 = vector.shape_cast %39 : vector<8x8xf32> to vector<1x8x8xf32>
    %48 = vector.shape_cast %40 : vector<8x8xf32> to vector<1x8x8xf32>
    %49 = tpu.concatenate %41, %42, %43, %44, %45, %46, %47, %48 in 0 : vector<1x8x8xf32>, vector<1x8x8xf32>, vector<1x8x8xf32>, vector<1x8x8xf32>, vector<1x8x8xf32>, vector<1x8x8xf32>, vector<1x8x8xf32>, vector<1x8x8xf32> -> vector<8x8x8xf32>
    %50 = vector.extract_strided_slice %15 {offsets = [0, 64], sizes = [8, 8], strides = [1, 1]} : vector<16x96xf32> to vector<8x8xf32>
    %51 = vector.extract_strided_slice %15 {offsets = [8, 64], sizes = [8, 8], strides = [1, 1]} : vector<16x96xf32> to vector<8x8xf32>
    %52 = vector.extract_strided_slice %15 {offsets = [0, 72], sizes = [8, 8], strides = [1, 1]} : vector<16x96xf32> to vector<8x8xf32>
    %53 = vector.extract_strided_slice %15 {offsets = [8, 72], sizes = [8, 8], strides = [1, 1]} : vector<16x96xf32> to vector<8x8xf32>
    %54 = vector.extract_strided_slice %15 {offsets = [0, 80], sizes = [8, 8], strides = [1, 1]} : vector<16x96xf32> to vector<8x8xf32>
    %55 = vector.extract_strided_slice %15 {offsets = [8, 80], sizes = [8, 8], strides = [1, 1]} : vector<16x96xf32> to vector<8x8xf32>
    %56 = vector.extract_strided_slice %15 {offsets = [0, 88], sizes = [8, 8], strides = [1, 1]} : vector<16x96xf32> to vector<8x8xf32>
    %57 = vector.extract_strided_slice %15 {offsets = [8, 88], sizes = [8, 8], strides = [1, 1]} : vector<16x96xf32> to vector<8x8xf32>
    %58 = vector.shape_cast %50 : vector<8x8xf32> to vector<1x8x8xf32>
    %59 = vector.shape_cast %51 : vector<8x8xf32> to vector<1x8x8xf32>
    %60 = vector.shape_cast %52 : vector<8x8xf32> to vector<1x8x8xf32>
    %61 = vector.shape_cast %53 : vector<8x8xf32> to vector<1x8x8xf32>
    %62 = vector.shape_cast %54 : vector<8x8xf32> to vector<1x8x8xf32>
    %63 = vector.shape_cast %55 : vector<8x8xf32> to vector<1x8x8xf32>
    %64 = vector.shape_cast %56 : vector<8x8xf32> to vector<1x8x8xf32>
    %65 = vector.shape_cast %57 : vector<8x8xf32> to vector<1x8x8xf32>
    %66 = tpu.concatenate %58, %59, %60, %61, %62, %63, %64, %65 in 0 : vector<1x8x8xf32>, vector<1x8x8xf32>, vector<1x8x8xf32>, vector<1x8x8xf32>, vector<1x8x8xf32>, vector<1x8x8xf32>, vector<1x8x8xf32>, vector<1x8x8xf32> -> vector<8x8x8xf32>
    "tpu.trace_start"() <{level = 10 : i32, message = "bqd,bkd->bqk"}> : () -> ()
    %cst_8 = arith.constant dense<0.000000e+00> : vector<8x8x8xf32>
    %67 = tpu.matmul %32, %49, %cst_8 {dimension_numbers = #tpu.dot_dimension_numbers<[2], [2], [1], [1], [0, 0, 0, 1, 1, 1], [0], [0]>} : vector<8x8x8xf32>, vector<8x8x8xf32>, vector<8x8x8xf32> -> vector<8x8x8xf32>
    "tpu.trace_stop"() : () -> ()
    %c0_9 = arith.constant 0 : index
    %c0_10 = arith.constant 0 : index
    %c0_11 = arith.constant 0 : index
    %68 = vector.load %arg4[%c0_9, %c0_10, %c0_11] : memref<8x8x8xf32, #tpu.memory_space<vmem>>, vector<8x8x8xf32>
    %69 = arith.addf %67, %68 : vector<8x8x8xf32>
    %cst_12 = arith.constant dense<0xFF800000> : vector<8x8xf32>
    %70 = vector.multi_reduction <maximumf>, %69, %cst_12 [2] : vector<8x8x8xf32> to vector<8x8xf32>
    %71 = vector.shape_cast %70 : vector<8x8xf32> to vector<8x8x1xf32>
    %72 = vector.broadcast %71 : vector<8x8x1xf32> to vector<8x8x8xf32>
    %73 = arith.subf %69, %72 : vector<8x8x8xf32>
    %74 = math.exp %73 : vector<8x8x8xf32>
    %cst_13 = arith.constant dense<0.000000e+00> : vector<8x8xf32>
    %75 = vector.multi_reduction <add>, %74, %cst_13 [2] : vector<8x8x8xf32> to vector<8x8xf32>
    %76 = vector.shape_cast %75 : vector<8x8xf32> to vector<8x8x1xf32>
    %77 = tpu.reciprocal %76 {approx = true} : vector<8x8x1xf32> -> vector<8x8x1xf32>
    %78 = vector.broadcast %77 : vector<8x8x1xf32> to vector<8x8x8xf32>
    %79 = arith.mulf %74, %78 : vector<8x8x8xf32>
    "tpu.trace_start"() <{level = 10 : i32, message = "bqk,bkd->bqd"}> : () -> ()
    %cst_14 = arith.constant dense<0.000000e+00> : vector<8x8x8xf32>
    %80 = tpu.matmul %79, %66, %cst_14 {dimension_numbers = #tpu.dot_dimension_numbers<[2], [1], [1], [2], [0, 0, 0, 1, 1, 2], [0], [0]>} : vector<8x8x8xf32>, vector<8x8x8xf32>, vector<8x8x8xf32> -> vector<8x8x8xf32>
    "tpu.trace_stop"() : () -> ()
    %81 = vector.extract_strided_slice %80 {offsets = [0, 0, 0], sizes = [1, 8, 8], strides = [1, 1, 1]} : vector<8x8x8xf32> to vector<1x8x8xf32>
    %82 = vector.shape_cast %81 : vector<1x8x8xf32> to vector<8x8xf32>
    %83 = vector.extract_strided_slice %80 {offsets = [2, 0, 0], sizes = [1, 8, 8], strides = [1, 1, 1]} : vector<8x8x8xf32> to vector<1x8x8xf32>
    %84 = vector.shape_cast %83 : vector<1x8x8xf32> to vector<8x8xf32>
    %85 = vector.extract_strided_slice %80 {offsets = [4, 0, 0], sizes = [1, 8, 8], strides = [1, 1, 1]} : vector<8x8x8xf32> to vector<1x8x8xf32>
    %86 = vector.shape_cast %85 : vector<1x8x8xf32> to vector<8x8xf32>
    %87 = vector.extract_strided_slice %80 {offsets = [6, 0, 0], sizes = [1, 8, 8], strides = [1, 1, 1]} : vector<8x8x8xf32> to vector<1x8x8xf32>
    %88 = vector.shape_cast %87 : vector<1x8x8xf32> to vector<8x8xf32>
    %89 = tpu.concatenate %82, %84, %86, %88 in 1 : vector<8x8xf32>, vector<8x8xf32>, vector<8x8xf32>, vector<8x8xf32> -> vector<8x32xf32>
    %90 = vector.extract_strided_slice %80 {offsets = [1, 0, 0], sizes = [1, 8, 8], strides = [1, 1, 1]} : vector<8x8x8xf32> to vector<1x8x8xf32>
    %91 = vector.shape_cast %90 : vector<1x8x8xf32> to vector<8x8xf32>
    %92 = vector.extract_strided_slice %80 {offsets = [3, 0, 0], sizes = [1, 8, 8], strides = [1, 1, 1]} : vector<8x8x8xf32> to vector<1x8x8xf32>
    %93 = vector.shape_cast %92 : vector<1x8x8xf32> to vector<8x8xf32>
    %94 = vector.extract_strided_slice %80 {offsets = [5, 0, 0], sizes = [1, 8, 8], strides = [1, 1, 1]} : vector<8x8x8xf32> to vector<1x8x8xf32>
    %95 = vector.shape_cast %94 : vector<1x8x8xf32> to vector<8x8xf32>
    %96 = vector.extract_strided_slice %80 {offsets = [7, 0, 0], sizes = [1, 8, 8], strides = [1, 1, 1]} : vector<8x8x8xf32> to vector<1x8x8xf32>
    %97 = vector.shape_cast %96 : vector<1x8x8xf32> to vector<8x8xf32>
    %98 = tpu.concatenate %91, %93, %95, %97 in 1 : vector<8x8xf32>, vector<8x8xf32>, vector<8x8xf32>, vector<8x8xf32> -> vector<8x32xf32>
    %99 = tpu.concatenate %89, %98 in 0 : vector<8x32xf32>, vector<8x32xf32> -> vector<16x32xf32>
    %c0_15 = arith.constant 0 : index
    %c0_16 = arith.constant 0 : index
    %100 = vector.load %arg3[%c0_15, %c0_16] : memref<32x32xf32, #tpu.memory_space<vmem>>, vector<32x32xf32>
    %cst_17 = arith.constant dense<0.000000e+00> : vector<16x32xf32>
    %101 = tpu.matmul %99, %100, %cst_17 {dimension_numbers = #tpu.dot_dimension_numbers<[1], [0], [0], [1], [0, 0, 1, 1], [], []>} : vector<16x32xf32>, vector<32x32xf32>, vector<16x32xf32> -> vector<16x32xf32>
    %102 = arith.addf %0, %101 : vector<16x32xf32>
    %103 = arith.mulf %102, %102 : vector<16x32xf32>
    %cst_18 = arith.constant dense<0.000000e+00> : vector<16xf32>
    %104 = vector.multi_reduction <add>, %103, %cst_18 [1] : vector<16x32xf32> to vector<16xf32>
    %105 = vector.shape_cast %104 : vector<16xf32> to vector<16x1xf32>
    %cst_19 = arith.constant 3.200000e+01 : f32
    %106 = vector.broadcast %cst_19 : f32 to vector<16x1xf32>
    %107 = arith.divf %105, %106 : vector<16x1xf32>
    %cst_20 = arith.constant 9.99999997E-7 : f32
    %108 = vector.broadcast %cst_20 : f32 to vector<16x1xf32>
    %109 = arith.addf %107, %108 : vector<16x1xf32>
    %110 = math.rsqrt %109 : vector<16x1xf32>
    %111 = vector.broadcast %110 : vector<16x1xf32> to vector<16x32xf32>
    %112 = arith.mulf %102, %111 : vector<16x32xf32>
    %c0_21 = arith.constant 0 : index
    %c0_22 = arith.constant 0 : index
    %113 = vector.load %arg5[%c0_21, %c0_22] : memref<1x32xf32, #tpu.memory_space<vmem>>, vector<1x32xf32>
    %114 = vector.broadcast %113 : vector<1x32xf32> to vector<16x32xf32>
    %115 = arith.mulf %112, %114 : vector<16x32xf32>
    %c0_23 = arith.constant 0 : index
    %c0_24 = arith.constant 0 : index
    %116 = vector.load %arg6[%c0_23, %c0_24] : memref<32x128xf32, #tpu.memory_space<vmem>>, vector<32x128xf32>
    %cst_25 = arith.constant dense<0.000000e+00> : vector<16x128xf32>
    %117 = tpu.matmul %115, %116, %cst_25 {dimension_numbers = #tpu.dot_dimension_numbers<[1], [0], [0], [1], [0, 0, 1, 1], [], []>} : vector<16x32xf32>, vector<32x128xf32>, vector<16x128xf32> -> vector<16x128xf32>
    %118 = vector.extract_strided_slice %117 {offsets = [0, 0], sizes = [16, 64], strides = [1, 1]} : vector<16x128xf32> to vector<16x64xf32>
    %cst_26 = arith.constant 5.000000e-01 : f32
    %119 = vector.broadcast %cst_26 : f32 to vector<16x64xf32>
    %120 = arith.mulf %119, %118 : vector<16x64xf32>
    %cst_27 = arith.constant 4.471500e-02 : f32
    %121 = vector.broadcast %cst_27 : f32 to vector<16x64xf32>
    %122 = arith.mulf %121, %118 : vector<16x64xf32>
    %123 = arith.mulf %122, %118 : vector<16x64xf32>
    %124 = arith.mulf %123, %118 : vector<16x64xf32>
    %125 = arith.addf %118, %124 : vector<16x64xf32>
    %cst_28 = arith.constant 0.797884583 : f32
    %126 = vector.broadcast %cst_28 : f32 to vector<16x64xf32>
    %127 = arith.mulf %126, %125 : vector<16x64xf32>
    %128 = math.tanh %127 : vector<16x64xf32>
    %cst_29 = arith.constant 1.000000e+00 : f32
    %129 = vector.broadcast %cst_29 : f32 to vector<16x64xf32>
    %130 = arith.addf %129, %128 : vector<16x64xf32>
    %131 = arith.mulf %120, %130 : vector<16x64xf32>
    %132 = vector.extract_strided_slice %117 {offsets = [0, 64], sizes = [16, 64], strides = [1, 1]} : vector<16x128xf32> to vector<16x64xf32>
    %133 = arith.mulf %131, %132 : vector<16x64xf32>
    %c0_30 = arith.constant 0 : index
    %c0_31 = arith.constant 0 : index
    %134 = vector.load %arg7[%c0_30, %c0_31] : memref<64x32xf32, #tpu.memory_space<vmem>>, vector<64x32xf32>
    %cst_32 = arith.constant dense<0.000000e+00> : vector<16x32xf32>
    %135 = tpu.matmul %133, %134, %cst_32 {dimension_numbers = #tpu.dot_dimension_numbers<[1], [0], [0], [1], [0, 0, 1, 1], [], []>} : vector<16x64xf32>, vector<64x32xf32>, vector<16x32xf32> -> vector<16x32xf32>
    %136 = arith.addf %102, %135 : vector<16x32xf32>
    %c0_33 = arith.constant 0 : index
    %c0_34 = arith.constant 0 : index
    %137 = vector.load %arg8[%c0_33, %c0_34] : memref<16x32xf32, #tpu.memory_space<vmem>>, vector<16x32xf32>
    tpu.vector_store %arg8[%c0_33, %c0_34], %136 {strides = array<i32>} : memref<16x32xf32, #tpu.memory_space<vmem>>, vector<16x32xf32>,
    return
  }
}

</mosaic_0001>

<bundles_post_ra>
// kernel: tpu_custom_call.1
= control target key start
LH: loop header
LB: loop body
LE: loop exit
PB: predicated region body
PF: predicated region fallthrough
CT: control target
= control target key end

     0   :  { %13 = vsyncpa [#allocation3], 0  ;;  %s2602_s0 = inlined_call_operand.hbm [shape: f32[16,32], index: 0, kind: input, shape index: {}]   ;;  %s2603_s1 = inlined_call_operand.vmem [shape: f32[1,32], index: 1, kind: input, shape index: {}]   ;;  %s2604_s2 = inlined_call_operand.vmem [shape: f32[32,96], index: 2, kind: input, shape index: {}]   ;;  %s2605_s3 = inlined_call_operand.hbm [shape: f32[32,32], index: 3, kind: input, shape index: {}]   ;;  %s2606_s4 = inlined_call_operand.vmem [shape: f32[8,8,8], index: 4, kind: input, shape index: {}]   ;;  %s2607_s5 = inlined_call_operand.vmem [shape: f32[1,32], index: 5, kind: input, shape index: {}]   ;;  %s2608_s6 = inlined_call_operand.hbm [shape: f32[32,128], index: 6, kind: input, shape index: {}]   ;;  %s2609_s7 = inlined_call_operand.vmem [shape: f32[64,32], index: 7, kind: input, shape index: {}]   ;;  %s2610_s8 = inlined_call_operand.hbm [shape: f32[16,32], index: 8, kind: output, shape index: {}]  }
   0x1   :  { %14 = vsyncpa [#allocation6], 0 }
   0x2   :  { %15 = vsyncpa [#allocation4], 0  ;;  %s2252_s27 = smov [#allocation5]   ;;  %s2253_s29 = smov [#allocation2]  }
   0x3   :  { %s37_s28 = sshll.u32 %s2252_s27, 4  ;;  %s21_s30 = sshll.u32 %s2253_s29, 4  ;;  %s38_s28 = int_to_ptr.vmem [resolvable:$true] %s37_s28  ;;  %s22_s30 = int_to_ptr.vmem [resolvable:$true] %s21_s30 }
   0x4   :  { %s2174_s9 = scalar_lea.vmem %s38_s28, 512  ;;  %p2179_p1 = scmp.lt.s32.totalorder %s38_s28, %s38_s28 }
   0x5   :  { %p2175_p0 = scmp.ne.s32.totalorder %s38_s28, %s2174_s9  ;;  %p2180_p2 = scmp.lt.s32.totalorder %s2174_s9, %s2174_s9 }
   0x7   :  { %p2181_p3 = por %p2180_p2, %p2179_p1 }
   0x9   :  { %p2182_p4 = pnand %p2181_p3, %p2175_p0 }
   0xb   :  { %2185 = shalt.err (!%p2182_p4)
}
   0xc   :  { %s2254_s10 = smov 128   ;;  %s2255_s11 = smov 8  }
   0xd   :  { %43 = dma.hbm_to_vmem [thread:$0]  %s2605_s3, 512, %s38_s28, [#allocation6], %s2254_s10, %s2254_s10, %s2255_s11  }
   0xe   :  { %s2194_s14 = scalar_lea.vmem %s22_s30, 256  ;;  %p2199_p6 = scmp.lt.s32.totalorder %s22_s30, %s22_s30 }
   0xf   :  { %p2195_p5 = scmp.ne.s32.totalorder %s22_s30, %s2194_s14  ;;  %p2200_p7 = scmp.lt.s32.totalorder %s2194_s14, %s2194_s14 }
  0x11   :  { %p2201_p8 = por %p2200_p7, %p2199_p6 }
  0x13   :  { %p2202_p9 = pnand %p2201_p8, %p2195_p5 }
  0x15   :  { %2205 = shalt.err (!%p2202_p9)
}
  0x16   :  { %27 = dma.hbm_to_vmem [thread:$0]  %s2602_s0, 256, %s22_s30, [#allocation3], %s2254_s10, %s2254_s10, %s2255_s11  }
  0x17   :  { %s2256_s17 = smov [#allocation7]  }
  0x18   :  { %s53_s18 = sshll.u32 %s2256_s17, 4  ;;  %s54_s18 = int_to_ptr.vmem [resolvable:$true] %s53_s18 }
  0x19   :  { %s2214_s19 = scalar_lea.vmem %s54_s18, 512  ;;  %p2219_p11 = scmp.lt.s32.totalorder %s54_s18, %s54_s18 }
  0x1a   :  { %p2215_p10 = scmp.ne.s32.totalorder %s54_s18, %s2214_s19  ;;  %p2220_p12 = scmp.lt.s32.totalorder %s2214_s19, %s2214_s19 }
  0x1c   :  { %p2221_p13 = por %p2220_p12, %p2219_p11 }
  0x1e   :  { %p2222_p0 = pnand %p2221_p13, %p2215_p10 }
  0x20   :  { %2225 = shalt.err (!%p2222_p0)
}
  0x21   :  { %59 = dma.hbm_to_vmem [thread:$0]  %s2608_s6, 512, %s54_s18, [#allocation6], %s2254_s10, %s2254_s10, %s2255_s11  }
  0x22   :  { %2246 = dma.done.wait [#allocation3], 256  }
  0x23   :  { %2247 = vsyncadd [#allocation3], 4294967040 }
  0x24   :  { %2248 = dma.done.wait [#allocation6], 1024  }
  0x25   :  { %2249 = vsyncadd [#allocation6], 4294966272  ;;  %v2330_v0 = vld [vmem:[#allocation2] sm:$0xff]  ;;  %vm75_vm0 = vcmask 261120   ;;  %v2332_v1 = vld [vmem:[#allocation2 + $0x8] sm:$0xff]  ;;  %s2258_s29 = smov 112  }
  0x26   :  { %v73_v2 = vmul.f32 %v2330_v0, %v2330_v0  ;;  %v74_v3 = vmul.f32 %v2332_v1, %v2332_v1  ;;  %v103_v6 = vld [vmem:[%s2604_s2 + $0x18] sm:$0xff]  ;;  %v102_v7 = vld [vmem:[%s2604_s2 + $0x10] sm:$0xff]  ;;  %v101_v8 = vld [vmem:[%s2604_s2 + $0x8] sm:$0xff]  ;;  %v2259_v25 = vmov 0.0   ;;  %vm2260_vm1 = vmmov 0   ;;  %s2262_s30 = smov 96  }
  0x27   :  { %1975 = vmatprep.subr.mxu1 %v103_v6  ;;  %v100_v9 = vld [vmem:[%s2604_s2] sm:$0xff]  ;;  %s2257_s2 = smov 120   ;;  %1996 = vmatprep.subr.mxu0 %v2259_v25  ;;  %vm209_vm2 = vcmask 64512   ;;  %v200_v44 = vld [vmem:[%s2606_s4 + $0x8] sm:$0xff]  ;;  %v202_v50 = vld [vmem:[%s2606_s4 + $0x18] sm:$0xff]  ;;  %s2263_s24 = smov 64  }
  0x28   :  { %v76_v4 = vsel %vm75_vm0, %v73_v2, 0.0  ;;  %v79_v5 = vsel %vm75_vm0, %v74_v3, 0.0  ;;  %1976 = vmatpush3.msra.mxu1 %v103_v6  ;;  %v1881_v17 = vld [vmem:[%s2603_s1] ss:$0 sm:$0xff]  ;;  %1998 = vmatprep.mubr.msk.f32.mxu0 %vm2260_vm1, %v2259_v25  ;;  %s2261_s1 = smov 104   ;;  %v201_v54 = vld [vmem:[%s2606_s4 + $0x10] sm:$0xff] }
  0x29   :  { %77 = vadd.xlane.f32.xlu0 %v76_v4  ;;  %1977 = vmatprep.subr.mxu1 %v102_v7  ;;  %v199_v40 = vld [vmem:[%s2606_s4] sm:$0xff]  ;;  %v204_v59 = vld [vmem:[%s2606_s4 + $0x28] sm:$0xff]  ;;  %v205_v6 = vld [vmem:[%s2606_s4 + $0x30] sm:$0xff]  ;;  %s2265_s25 = smov 24   ;;  %vm1525_vm3 = vcmask 130048   ;;  %vm1527_vm4 = vcmask 195584  }
  0x2a   :  { %1978 = vmatpush3.msra.mxu1 %v102_v7  ;;  %v203_v60 = vld [vmem:[%s2606_s4 + $0x20] sm:$0xff]  ;;  %vm1777_vm5 = vcmask 523264  }
  0x2b   :  { %1979 = vmatprep.subr.mxu1 %v101_v8 }
  0x2c   :  { %1980 = vmatpush3.msra.mxu1 %v101_v8 }
  0x2d   :  { %80 = vadd.xlane.f32.xlu0 %v79_v5  ;;  %1981 = vmatprep.subr.mxu1 %v100_v9 }
  0x2e   :  { %1982 = vmatpush3.msra.mxu1 %v100_v9 }
  0x2f   :  { %1986 = vmatprep.subr.mxu1 %v2259_v25 }
  0xb2   :  { %v78_v10 = vpop.xlane.xlu0 %77 }
  0xb3   :  { %v83_v11 = vmul.f32 0.03125, %v78_v10 }
  0xb5   :  { %v85_v12 = vadd.f32 1e-06, %v83_v11 }
  0xb6   :  { %v81_v13 = vpop.xlane.xlu0 %80 }
  0xb7   :  { %2122 = vrsqrt.f32 %v85_v12  ;;  %v84_v14 = vmul.f32 0.03125, %v81_v13  ;;  %v206_v12 = vld [vmem:[%s2606_s4 + $0x38] sm:$0xff]  ;;  %s2264_s4 = smov 16  }
  0xb9   :  { %v86_v15 = vadd.f32 1e-06, %v84_v14 }
  0xbb   :  { %2124 = vrsqrt.f32 %v86_v15 }
  0xc4   :  { %v2123_v16 = vpop.eup %2122 }
  0xc5   :  { %v89_v18 = vmul.f32 %v2123_v16, %v2330_v0 }
  0xc7   :  { %v98_v19 = vmul.f32 %v1881_v17, %v89_v18 }
  0xc8   :  { %v2125_v20 = vpop.eup %2124 }
  0xc9   :  { %v90_v21 = vmul.f32 %v2125_v20, %v2332_v1  ;;  %1983 = vmatprep.mubr.msk.f32.mxu1 %vm75_vm0, %v98_v19 }
  0xcb   :  { %v99_v22 = vmul.f32 %v1881_v17, %v90_v21 }
  0xcd   :  { %1984 = vmatmul.mubr.msk.f32.vlgmr.msra.gmra.mxu1 %vm75_vm0, %v99_v22 }
  0xce   :  { %1988 = vmatprep.mubr.msk.f32.mxu1 %vm2260_vm1, %v2259_v25 }
 0x18d   :  { %v2359_v23 = vpop.f32.mrf.mxu1 }
 0x18e   :  { %189 = vrot.lane.b32.xlu1 %v2359_v23, %s2257_s2 }
 0x18f   :  { %v2362_v24 = vpop.f32.mrf.mxu1 }
 0x190   :  { %191 = vrot.lane.b32.xlu0 %v2362_v24, %s2258_s29 }
 0x192   :  { %186 = vrot.lane.b32.xlu1 %v2362_v24, %s2257_s2 }
 0x196   :  { %193 = vrot.lane.b32.xlu1 %v2359_v23, %s2258_s29 }
 0x19a   :  { %195 = vrot.lane.b32.xlu1 %v2362_v24, %s2261_s1 }
 0x19e   :  { %197 = vrot.lane.b32.xlu1 %v2359_v23, %s2261_s1 }
 0x1a2   :  { %207 = vrot.lane.b32.xlu1 %v2362_v24, %s2262_s30 }
 0x1a6   :  { %284 = vrot.lane.b32.xlu1 %v2359_v23, %s2262_s30 }
 0x200   :  { %v2377_v26 = vpop.permute.xlu1 %189 }
 0x201   :  { %436 = vrot.lane.b32.xlu0 %v2377_v26, %s2262_s30 }
 0x202   :  { %v2383_v28 = vpop.permute.xlu0 %191 }
 0x204   :  { %v2380_v27 = vpop.permute.xlu1 %186 }
 0x205   :  { %360 = vrot.lane.b32.xlu1 %v2380_v27, %s2262_s30 }
 0x208   :  { %v2385_v29 = vpop.permute.xlu1 %193 }
 0x209   :  { %512 = vrot.lane.b32.xlu1 %v2383_v28, %s2262_s30  ;;  %588 = vrot.lane.b32.xlu0 %v2385_v29, %s2262_s30 }
 0x20c   :  { %v2389_v30 = vpop.permute.xlu1 %195 }
 0x20d   :  { %664 = vrot.lane.b32.xlu1 %v2389_v30, %s2262_s30 }
 0x210   :  { %v2392_v31 = vpop.permute.xlu1 %197 }
 0x211   :  { %740 = vrot.lane.b32.xlu0 %v2392_v31, %s2262_s30 }
 0x214   :  { %v208_v32 = vpop.permute.xlu1 %207 }
 0x215   :  { %1987 = vmatpush3.xpose.msk.msra.mxu1 %vm209_vm2, %v208_v32 }
 0x216   :  { %1991 = vmatprep.subr.mxu1 %v2259_v25 }
 0x218   :  { %1989 = vmatmul.mubr.msk.f32.vlgmr.msra.gmra.mxu1 %vm209_vm2, %v2362_v24  ;;  %v285_v33 = vpop.permute.xlu1 %284 }
 0x219   :  { %1992 = vmatpush3.xpose.msk.msra.mxu1 %vm209_vm2, %v285_v33  ;;  %1993 = vmatprep.mubr.msk.f32.mxu1 %vm2260_vm1, %v2259_v25 }
 0x21a   :  { %2001 = vmatprep.subr.mxu1 %v2259_v25 }
 0x21c   :  { %1994 = vmatmul.mubr.msk.f32.vlgmr.msra.gmra.mxu1 %vm209_vm2, %v2359_v23 }
 0x21d   :  { %2003 = vmatprep.mubr.msk.f32.mxu1 %vm2260_vm1, %v2259_v25 }
 0x273   :  { %v437_v34 = vpop.permute.xlu0 %436 }
 0x274   :  { %2002 = vmatpush3.xpose.msk.msra.mxu1 %vm209_vm2, %v437_v34 }
 0x275   :  { %2011 = vmatprep.subr.mxu1 %v2259_v25 }
 0x277   :  { %2004 = vmatmul.mubr.msk.f32.vlgmr.msra.gmra.mxu1 %vm209_vm2, %v2377_v26  ;;  %v361_v35 = vpop.permute.xlu1 %360 }
 0x278   :  { %1997 = vmatpush3.xpose.msk.msra.mxu0 %vm209_vm2, %v361_v35  ;;  %2013 = vmatprep.mubr.msk.f32.mxu1 %vm2260_vm1, %v2259_v25 }
 0x279   :  { %2006 = vmatprep.subr.mxu0 %v2259_v25 }
 0x27b   :  { %v589_v36 = vpop.permute.xlu0 %588  ;;  %1999 = vmatmul.mubr.msk.f32.vlgmr.msra.gmra.mxu0 %vm209_vm2, %v2380_v27  ;;  %v513_v37 = vpop.permute.xlu1 %512 }
 0x27c   :  { %2007 = vmatpush3.xpose.msk.msra.mxu0 %vm209_vm2, %v513_v37  ;;  %2012 = vmatpush3.xpose.msk.msra.mxu1 %vm209_vm2, %v589_v36 }
 0x27d   :  { %2008 = vmatprep.mubr.msk.f32.mxu0 %vm2260_vm1, %v2259_v25  ;;  %2016 = vmatprep.subr.mxu0 %v2259_v25 }
 0x27e   :  { %2021 = vmatprep.subr.mxu1 %v2259_v25 }
 0x27f   :  { %2009 = vmatmul.mubr.msk.f32.vlgmr.msra.gmra.mxu0 %vm209_vm2, %v2383_v28  ;;  %2014 = vmatmul.mubr.msk.f32.vlgmr.msra.gmra.mxu1 %vm209_vm2, %v2385_v29  ;;  %v665_v38 = vpop.permute.xlu1 %664 }
 0x280   :  { %2017 = vmatpush3.xpose.msk.msra.mxu0 %vm209_vm2, %v665_v38  ;;  %2018 = vmatprep.mubr.msk.f32.mxu0 %vm2260_vm1, %v2259_v25 }
 0x281   :  { %2023 = vmatprep.mubr.msk.f32.mxu1 %vm2260_vm1, %v2259_v25  ;;  %2026 = vmatprep.subr.mxu0 %v2259_v25 }
 0x283   :  { %v741_v39 = vpop.permute.xlu0 %740  ;;  %2019 = vmatmul.mubr.msk.f32.vlgmr.msra.gmra.mxu0 %vm209_vm2, %v2389_v30 }
 0x284   :  { %2022 = vmatpush3.xpose.msk.msra.mxu1 %vm209_vm2, %v741_v39  ;;  %2028 = vmatprep.mubr.msk.f32.mxu0 %vm2260_vm1, %v2259_v25 }
 0x285   :  { %2031 = vmatprep.subr.mxu1 %v2259_v25 }
 0x287   :  { %2024 = vmatmul.mubr.msk.f32.vlgmr.msra.gmra.mxu1 %vm209_vm2, %v2392_v31 }
 0x288   :  { %2033 = vmatprep.mubr.msk.f32.mxu1 %vm2260_vm1, %v2259_v25 }
 0x2d8   :  { %v280_v41 = vpop.f32.mrf.mxu1 }
 0x2d9   :  { %v281_v42 = vadd.f32 %v280_v41, %v199_v40 }
 0x2da   :  { %v1990_v43 = vpop.f32.mrf.mxu1 }
 0x2db   :  { %v816_v45 = vsel %vm209_vm2, %v281_v42, -inf }
 0x2dc   :  { %817 = vmax.xlane.f32.xlu1 %v816_v45  ;;  %v356_v46 = vpop.f32.mrf.mxu1 }
 0x2dd   :  { %v357_v47 = vadd.f32 %v356_v46, %v200_v44 }
 0x2de   :  { %v1995_v48 = vpop.f32.mrf.mxu1 }
 0x2df   :  { %v819_v49 = vsel %vm209_vm2, %v357_v47, -inf }
 0x2e0   :  { %820 = vmax.xlane.f32.xlu0 %v819_v49 }
 0x337   :  { %v508_v51 = vpop.f32.mrf.mxu1 }
 0x338   :  { %v509_v52 = vadd.f32 %v508_v51, %v202_v50 }
 0x339   :  { %v2005_v53 = vpop.f32.mrf.mxu1 }
 0x33a   :  { %v825_v55 = vsel %vm209_vm2, %v509_v52, -inf }
 0x33b   :  { %826 = vmax.xlane.f32.xlu1 %v825_v55  ;;  %v432_v56 = vpop.f32.mrf.mxu0 }
 0x33c   :  { %v433_v57 = vadd.f32 %v432_v56, %v201_v54 }
 0x33d   :  { %v2000_v58 = vpop.f32.mrf.mxu0 }
 0x33e   :  { %v822_v61 = vsel %vm209_vm2, %v433_v57, -inf }
 0x33f   :  { %v660_v62 = vpop.f32.mrf.mxu1  ;;  %823 = vmax.xlane.f32.xlu0 %v822_v61  ;;  %v584_v63 = vpop.f32.mrf.mxu0 }
 0x340   :  { %v661_v2 = vadd.f32 %v660_v62, %v204_v59  ;;  %v585_v3 = vadd.f32 %v584_v63, %v203_v60 }
 0x341   :  { %v2010_v4 = vpop.f32.mrf.mxu0  ;;  %v2015_v5 = vpop.f32.mrf.mxu1 }
 0x342   :  { %v831_v7 = vsel %vm209_vm2, %v661_v2, -inf  ;;  %v828_v8 = vsel %vm209_vm2, %v585_v3, -inf }
 0x343   :  { %832 = vmax.xlane.f32.xlu1 %v831_v7  ;;  %829 = vmax.xlane.f32.xlu0 %v828_v8  ;;  %v736_v9 = vpop.f32.mrf.mxu0 }
 0x344   :  { %v737_v10 = vadd.f32 %v736_v9, %v205_v6 }
 0x345   :  { %v2020_v11 = vpop.f32.mrf.mxu0 }
 0x346   :  { %v834_v13 = vsel %vm209_vm2, %v737_v10, -inf }
 0x347   :  { %v812_v14 = vpop.f32.mrf.mxu1  ;;  %835 = vmax.xlane.f32.xlu0 %v834_v13 }
 0x348   :  { %v813_v15 = vadd.f32 %v812_v14, %v206_v12 }
 0x349   :  { %v2025_v16 = vpop.f32.mrf.mxu1 }
 0x34a   :  { %v837_v17 = vsel %vm209_vm2, %v813_v15, -inf }
 0x34b   :  { %838 = vmax.xlane.f32.xlu1 %v837_v17 }
 0x35c   :  { %980 = vrot.lane.b32.xlu1 %v2359_v23, %s2263_s24 }
 0x35d   :  { %904 = vrot.lane.b32.xlu0 %v2362_v24, %s2263_s24 }
 0x360   :  { %1056 = vrot.lane.b32.xlu1 %v2380_v27, %s2263_s24 }
 0x361   :  { %1132 = vrot.lane.b32.xlu0 %v2377_v26, %s2263_s24 }
 0x364   :  { %1208 = vrot.lane.b32.xlu1 %v2383_v28, %s2263_s24 }
 0x365   :  { %1284 = vrot.lane.b32.xlu0 %v2385_v29, %s2263_s24  ;;  %v818_v18 = vpop.xlane.xlu1 %817 }
 0x366   :  { %v840_v19 = vsub.f32 %v281_v42, %v818_v18 }
 0x368   :  { %v848_v21 = vmul.f32 1.442695, %v840_v19 }
 0x369   :  { %v821_v20 = vpop.xlane.xlu0 %820 }
 0x36a   :  { %v841_v22 = vsub.f32 %v357_v47, %v821_v20  ;;  %2126 = vpow2.f32 %v848_v21 }
 0x36c   :  { %v850_v23 = vmul.f32 1.442695, %v841_v22 }
 0x36e   :  { %2128 = vpow2.f32 %v850_v23 }
 0x377   :  { %v2487_v24 = vpop.eup %2126 }
 0x378   :  { %v864_v27 = vsel %vm209_vm2, %v2487_v24, 0.0 }
 0x37b   :  { %v2491_v26 = vpop.eup %2128 }
 0x37c   :  { %v867_v28 = vsel %vm209_vm2, %v2491_v26, 0.0 }
 0x384   :  { %865 = vadd.xlane.f32.xlu0 %v864_v27 }
 0x388   :  { %868 = vadd.xlane.f32.xlu1 %v867_v28 }
 0x3c4   :  { %v827_v29 = vpop.xlane.xlu1 %826 }
 0x3c5   :  { %v843_v32 = vsub.f32 %v509_v52, %v827_v29 }
 0x3c7   :  { %v854_v33 = vmul.f32 1.442695, %v843_v32 }
 0x3c8   :  { %v824_v34 = vpop.xlane.xlu0 %823 }
 0x3c9   :  { %2130 = vpow2.f32 %v854_v33  ;;  %v842_v35 = vsub.f32 %v433_v57, %v824_v34 }
 0x3cb   :  { %v852_v36 = vmul.f32 1.442695, %v842_v35 }
 0x3cc   :  { %v830_v37 = vpop.xlane.xlu0 %829  ;;  %v833_v38 = vpop.xlane.xlu1 %832 }
 0x3cd   :  { %2132 = vpow2.f32 %v852_v36  ;;  %v844_v39 = vsub.f32 %v585_v3, %v830_v37  ;;  %v845_v40 = vsub.f32 %v661_v2, %v833_v38  ;;  %v1547_v36 = vld [vmem:[#allocation5 + $0x18] sm:$0xff]  ;;  %v1546_v37 = vld [vmem:[#allocation5 + $0x10] sm:$0xff] }
 0x3cf   :  { %v856_v41 = vmul.f32 1.442695, %v844_v39  ;;  %v858_v42 = vmul.f32 1.442695, %v845_v40  ;;  %v1545_v39 = vld [vmem:[#allocation5 + $0x8] sm:$0xff] }
 0x3d0   :  { %v836_v43 = vpop.xlane.xlu0 %835 }
 0x3d1   :  { %2134 = vpow2.f32 %v856_v41  ;;  %v846_v44 = vsub.f32 %v737_v10, %v836_v43 }
 0x3d2   :  { %2136 = vpow2.f32 %v858_v42 }
 0x3d3   :  { %v860_v45 = vmul.f32 1.442695, %v846_v44 }
 0x3d4   :  { %v905_v46 = vpop.permute.xlu0 %904  ;;  %v839_v47 = vpop.xlane.xlu1 %838 }
 0x3d5   :  { %2138 = vpow2.f32 %v860_v45  ;;  %v847_v48 = vsub.f32 %v813_v15, %v839_v47  ;;  %2027 = vmatpush3.msra.mxu0 %v905_v46 }
 0x3d6   :  { %v2131_v49 = vpop.eup %2130  ;;  %2036 = vmatprep.subr.mxu0 %v2259_v25 }
 0x3d7   :  { %v862_v50 = vmul.f32 1.442695, %v847_v48  ;;  %v873_v51 = vsel %vm209_vm2, %v2131_v49, 0.0 }
 0x3d8   :  { %874 = vadd.xlane.f32.xlu1 %v873_v51  ;;  %v981_v52 = vpop.permute.xlu1 %980  ;;  %v1133_v63 = vpop.permute.xlu0 %1132 }
 0x3d9   :  { %2140 = vpow2.f32 %v862_v50  ;;  %2032 = vmatpush3.msra.mxu1 %v981_v52 }
 0x3da   :  { %v2133_v53 = vpop.eup %2132  ;;  %2041 = vmatprep.subr.mxu1 %v2259_v25 }
 0x3db   :  { %v870_v54 = vsel %vm209_vm2, %v2133_v53, 0.0 }
 0x3dc   :  { %871 = vadd.xlane.f32.xlu0 %v870_v54  ;;  %v1057_v2 = vpop.permute.xlu1 %1056  ;;  %v1285_v3 = vpop.permute.xlu0 %1284 }
 0x3de   :  { %v2135_v55 = vpop.eup %2134 }
 0x3df   :  { %v2137_v56 = vpop.eup %2136  ;;  %v876_v57 = vsel %vm209_vm2, %v2135_v55, 0.0 }
 0x3e0   :  { %877 = vadd.xlane.f32.xlu0 %v876_v57  ;;  %v879_v58 = vsel %vm209_vm2, %v2137_v56, 0.0  ;;  %v1209_v4 = vpop.permute.xlu1 %1208 }
 0x3e1   :  { %880 = vadd.xlane.f32.xlu1 %v879_v58 }
 0x3e2   :  { %v2501_v59 = vpop.eup %2138 }
 0x3e3   :  { %v882_v60 = vsel %vm209_vm2, %v2501_v59, 0.0 }
 0x3e4   :  { %883 = vadd.xlane.f32.xlu0 %v882_v60 }
 0x3e6   :  { %v2505_v61 = vpop.eup %2140 }
 0x3e7   :  { %v885_v62 = vsel %vm209_vm2, %v2505_v61, 0.0 }
 0x3e8   :  { %886 = vadd.xlane.f32.xlu1 %v885_v62 }
 0x3f9   :  { %1360 = vrot.lane.b32.xlu1 %v2389_v30, %s2263_s24 }
 0x3fa   :  { %1436 = vrot.lane.b32.xlu0 %v2392_v31, %s2263_s24 }
 0x40d   :  { %v866_v5 = vpop.xlane.xlu0 %865 }
 0x40e   :  { %2142 = vrcp.f32 %v866_v5 }
 0x411   :  { %v869_v6 = vpop.xlane.xlu1 %868 }
 0x412   :  { %2144 = vrcp.f32 %v869_v6 }
 0x41b   :  { %v2143_v7 = vpop.eup %2142 }
 0x41c   :  { %v896_v8 = vmul.f32 %v2143_v7, %v2487_v24 }
 0x41e   :  { %2029 = vmatmul.mubr.msk.f32.vlgmr.msra.gmra.mxu0 %vm209_vm2, %v896_v8 }
 0x41f   :  { %v2145_v9 = vpop.eup %2144  ;;  %2037 = vmatpush3.msra.mxu0 %v1057_v2  ;;  %2038 = vmatprep.mubr.msk.f32.mxu0 %vm2260_vm1, %v2259_v25 }
 0x420   :  { %v897_v30 = vmul.f32 %v2145_v9, %v2491_v26  ;;  %2046 = vmatprep.subr.mxu0 %v2259_v25  ;;  %v1659_v9 = vld [vmem:[#allocation7 + $0x18] sm:$0xff] }
 0x422   :  { %2034 = vmatmul.mubr.msk.f32.vlgmr.msra.gmra.mxu1 %vm209_vm2, %v897_v30  ;;  %v1658_v30 = vld [vmem:[#allocation7 + $0x10] sm:$0xff] }
 0x423   :  { %2042 = vmatpush3.msra.mxu1 %v1133_v63  ;;  %2043 = vmatprep.mubr.msk.f32.mxu1 %vm2260_vm1, %v2259_v25 }
 0x424   :  { %2051 = vmatprep.subr.mxu1 %v2259_v25 }
 0x461   :  { %v875_v31 = vpop.xlane.xlu1 %874 }
 0x462   :  { %2146 = vrcp.f32 %v875_v31 }
 0x465   :  { %v872_v10 = vpop.xlane.xlu0 %871 }
 0x466   :  { %2148 = vrcp.f32 %v872_v10 }
 0x469   :  { %v878_v11 = vpop.xlane.xlu0 %877 }
 0x46a   :  { %2150 = vrcp.f32 %v878_v11  ;;  %v881_v12 = vpop.xlane.xlu1 %880 }
 0x46b   :  { %2152 = vrcp.f32 %v881_v12 }
 0x46d   :  { %v884_v13 = vpop.xlane.xlu0 %883 }
 0x46e   :  { %2154 = vrcp.f32 %v884_v13 }
 0x46f   :  { %v2147_v14 = vpop.eup %2146 }
 0x470   :  { %v899_v15 = vmul.f32 %v2147_v14, %v2131_v49 }
 0x471   :  { %v887_v16 = vpop.xlane.xlu1 %886  ;;  %v1437_v27 = vpop.permute.xlu0 %1436 }
 0x472   :  { %2156 = vrcp.f32 %v887_v16  ;;  %2044 = vmatmul.mubr.msk.f32.vlgmr.msra.gmra.mxu1 %vm209_vm2, %v899_v15 }
 0x473   :  { %v2149_v17 = vpop.eup %2148  ;;  %2052 = vmatpush3.msra.mxu1 %v1285_v3  ;;  %2053 = vmatprep.mubr.msk.f32.mxu1 %vm2260_vm1, %v2259_v25 }
 0x474   :  { %v898_v18 = vmul.f32 %v2149_v17, %v2133_v53  ;;  %2061 = vmatprep.subr.mxu1 %v2259_v25 }
 0x475   :  { %v1361_v23 = vpop.permute.xlu1 %1360 }
 0x476   :  { %2039 = vmatmul.mubr.msk.f32.vlgmr.msra.gmra.mxu0 %vm209_vm2, %v898_v18 }
 0x477   :  { %v2151_v19 = vpop.eup %2150  ;;  %2047 = vmatpush3.msra.mxu0 %v1209_v4  ;;  %2048 = vmatprep.mubr.msk.f32.mxu0 %vm2260_vm1, %v2259_v25 }
 0x478   :  { %v2153_v20 = vpop.eup %2152  ;;  %2056 = vmatprep.subr.mxu0 %v2259_v25  ;;  %v900_v21 = vmul.f32 %v2151_v19, %v2135_v55  ;;  %v1910_v19 = vld [vmem:[%s2607_s5] ss:$0 sm:$0xff] }
 0x479   :  { %v901_v22 = vmul.f32 %v2153_v20, %v2137_v56 }
 0x47a   :  { %2049 = vmatmul.mubr.msk.f32.vlgmr.msra.gmra.mxu0 %vm209_vm2, %v900_v21 }
 0x47b   :  { %v2155_v24 = vpop.eup %2154  ;;  %2054 = vmatmul.mubr.msk.f32.vlgmr.msra.gmra.mxu1 %vm209_vm2, %v901_v22  ;;  %2057 = vmatpush3.msra.mxu0 %v1361_v23  ;;  %v1776_v22 = vld [vmem:[%s2609_s7 + $0x38] sm:$0xff]  ;;  %v1775_v23 = vld [vmem:[%s2609_s7 + $0x30] sm:$0xff] }
 0x47c   :  { %2062 = vmatpush3.msra.mxu1 %v1437_v27  ;;  %2058 = vmatprep.mubr.msk.f32.mxu0 %vm2260_vm1, %v2259_v25  ;;  %v902_v26 = vmul.f32 %v2155_v24, %v2501_v59  ;;  %v1774_v24 = vld [vmem:[%s2609_s7 + $0x28] sm:$0xff]  ;;  %v1773_v27 = vld [vmem:[%s2609_s7 + $0x20] sm:$0xff] }
 0x47d   :  { %2063 = vmatprep.mubr.msk.f32.mxu1 %vm2260_vm1, %v2259_v25  ;;  %2066 = vmatprep.subr.mxu0 %v1547_v36  ;;  %v1544_v25 = vld [vmem:[#allocation5] sm:$0xff] }
 0x47e   :  { %2059 = vmatmul.mubr.msk.f32.vlgmr.msra.gmra.mxu0 %vm209_vm2, %v902_v26  ;;  %2077 = vmatprep.subr.mxu1 %v1659_v9  ;;  %v1772_v26 = vld [vmem:[%s2609_s7 + $0x18] sm:$0xff] }
 0x47f   :  { %v2157_v28 = vpop.eup %2156  ;;  %2067 = vmatpush3.msra.mxu0 %v1547_v36 }
 0x480   :  { %v903_v29 = vmul.f32 %v2157_v28, %v2505_v61  ;;  %2068 = vmatprep.subr.mxu0 %v1546_v37  ;;  %v1771_v28 = vld [vmem:[%s2609_s7 + $0x10] sm:$0xff] }
 0x481   :  { %2069 = vmatpush3.msra.mxu0 %v1546_v37 }
 0x482   :  { %2064 = vmatmul.mubr.msk.f32.vlgmr.msra.gmra.mxu1 %vm209_vm2, %v903_v29  ;;  %2070 = vmatprep.subr.mxu0 %v1545_v39  ;;  %v1770_v29 = vld [vmem:[%s2609_s7 + $0x8] sm:$0xff] }
 0x483   :  { %2071 = vmatpush3.msra.mxu0 %v1545_v39  ;;  %2078 = vmatpush3.msra.mxu1 %v1659_v9 }
 0x484   :  { %2072 = vmatprep.subr.mxu0 %v1544_v25  ;;  %2079 = vmatprep.subr.mxu1 %v1658_v30 }
 0x485   :  { %2073 = vmatpush3.msra.mxu0 %v1544_v25  ;;  %2080 = vmatpush3.msra.mxu1 %v1658_v30 }
 0x486   :  { %2088 = vmatprep.subr.mxu0 %v1776_v22 }
 0x4de   :  { %v976_v32 = vpop.f32.mrf.mxu0 }
 0x4e0   :  { %v2030_v33 = vpop.f32.mrf.mxu0 }
 0x4e2   :  { %v1052_v34 = vpop.f32.mrf.mxu1 }
 0x4e4   :  { %v2035_v35 = vpop.f32.mrf.mxu1 }
 0x532   :  { %v1204_v38 = vpop.f32.mrf.mxu1 }
 0x533   :  { %1530 = vrot.lane.b32.xlu1 %v1204_v38, %s2255_s11 }
 0x534   :  { %v2045_v40 = vpop.f32.mrf.mxu1 }
 0x536   :  { %v1128_v41 = vpop.f32.mrf.mxu0 }
 0x537   :  { %1513 = vrot.lane.b32.xlu1 %v1128_v41, %s2255_s11 }
 0x538   :  { %v2040_v42 = vpop.f32.mrf.mxu0 }
 0x53a   :  { %v1280_v43 = vpop.f32.mrf.mxu0 }
 0x53b   :  { %v1356_v44 = vpop.f32.mrf.mxu1  ;;  %1517 = vrot.lane.b32.xlu0 %v1280_v43, %s2264_s4 }
 0x53c   :  { %1534 = vrot.lane.b32.xlu1 %v1356_v44, %s2264_s4  ;;  %v2050_v45 = vpop.f32.mrf.mxu0 }
 0x53d   :  { %v2055_v46 = vpop.f32.mrf.mxu1 }
 0x53e   :  { %v1432_v47 = vpop.f32.mrf.mxu0 }
 0x53f   :  { %1521 = vrot.lane.b32.xlu0 %v1432_v47, %s2265_s25 }
 0x540   :  { %v2060_v48 = vpop.f32.mrf.mxu0 }
 0x542   :  { %v1508_v49 = vpop.f32.mrf.mxu1 }
 0x543   :  { %1538 = vrot.lane.b32.xlu0 %v1508_v49, %s2265_s25 }
 0x544   :  { %v2065_v50 = vpop.f32.mrf.mxu1 }
 0x5a5   :  { %v1531_v51 = vpop.permute.xlu1 %1530 }
 0x5a6   :  { %v1541_v59 = vsel %vm209_vm2, %v1052_v34, %v1531_v51 }
 0x5a9   :  { %v1514_v52 = vpop.permute.xlu1 %1513 }
 0x5aa   :  { %v1524_v54 = vsel %vm209_vm2, %v976_v32, %v1514_v52  ;;  %v1769_v32 = vld [vmem:[%s2609_s7] sm:$0xff]  ;;  %s2266_s7 = smov [#allocation8]  }
 0x5ab   :  { %s1868_s20 = sshll.u32 %s2266_s7, 4  ;;  %s1869_s20 = int_to_ptr.vmem [resolvable:$true] %s1868_s20 }
 0x5ac   :  { %s2226_s0 = scalar_lea.vmem %s1869_s20, 256  ;;  %p2231_p2 = scmp.lt.s32.totalorder %s1869_s20, %s1869_s20 }
 0x5ad   :  { %v1518_v53 = vpop.permute.xlu0 %1517  ;;  %p2227_p1 = scmp.ne.s32.totalorder %s1869_s20, %s2226_s0  ;;  %p2232_p3 = scmp.lt.s32.totalorder %s2226_s0, %s2226_s0 }
 0x5ae   :  { %v1526_v55 = vsel %vm1525_vm3, %v1524_v54, %v1518_v53  ;;  %v1535_v57 = vpop.permute.xlu1 %1534 }
 0x5af   :  { %v1542_v60 = vsel %vm1525_vm3, %v1541_v59, %v1535_v57  ;;  %p2233_p4 = por %p2232_p3, %p2231_p2 }
 0x5b1   :  { %v1522_v56 = vpop.permute.xlu0 %1521  ;;  %p2234_p5 = pnand %p2233_p4, %p2227_p1 }
 0x5b2   :  { %v1528_v58 = vsel %vm1527_vm4, %v1526_v55, %v1522_v56 }
 0x5b3   :  { %2074 = vmatprep.mubr.msk.f32.mxu0 %vm75_vm0, %v1528_v58 }
 0x5b5   :  { %v1539_v61 = vpop.permute.xlu0 %1538 }
 0x5b6   :  { %v1543_v62 = vsel %vm1527_vm4, %v1542_v60, %v1539_v61 }
 0x5b7   :  { %2075 = vmatmul.mubr.msk.f32.vlgmr.msra.gmra.mxu0 %vm75_vm0, %v1543_v62 }
 0x5b8   :  { %2089 = vmatpush3.msra.mxu0 %v1776_v22 }
 0x5b9   :  { %2090 = vmatprep.subr.mxu0 %v1775_v23 }
 0x5ba   :  { %2091 = vmatpush3.msra.mxu0 %v1775_v23 }
 0x5bb   :  { %2092 = vmatprep.subr.mxu0 %v1774_v24 }
 0x5bc   :  { %2093 = vmatpush3.msra.mxu0 %v1774_v24 }
 0x5bd   :  { %2094 = vmatprep.subr.mxu0 %v1773_v27 }
 0x5be   :  { %2095 = vmatpush3.msra.mxu0 %v1773_v27 }
 0x5bf   :  { %2096 = vmatprep.subr.mxu0 %v1772_v26 }
 0x5c0   :  { %2097 = vmatpush3.msra.mxu0 %v1772_v26 }
 0x5c1   :  { %2098 = vmatprep.subr.mxu0 %v1771_v28 }
 0x5c2   :  { %2099 = vmatpush3.msra.mxu0 %v1771_v28 }
 0x5c3   :  { %2100 = vmatprep.subr.mxu0 %v1770_v29 }
 0x5c4   :  { %2101 = vmatpush3.msra.mxu0 %v1770_v29 }
 0x5c5   :  { %2102 = vmatprep.subr.mxu0 %v1769_v32 }
 0x5c6   :  { %2103 = vmatpush3.msra.mxu0 %v1769_v32 }
 0x677   :  { %v2076_v63 = vpop.f32.mrf.mxu0 }
 0x678   :  { %v2548_v2 = vadd.f32 %v2076_v63, %v2332_v1  ;;  %v1657_v1 = vld [vmem:[#allocation7 + $0x8] sm:$0xff] }
 0x679   :  { %v1620_v3 = vpop.f32.mrf.mxu0  ;;  %2081 = vmatprep.subr.mxu1 %v1657_v1 }
 0x67a   :  { %v2551_v4 = vadd.f32 %v1620_v3, %v2330_v0  ;;  %v1632_v5 = vmul.f32 %v2548_v2, %v2548_v2  ;;  %v1656_v0 = vld [vmem:[#allocation7] sm:$0xff]  ;;  %2082 = vmatpush3.msra.mxu1 %v1657_v1 }
 0x67b   :  { %2083 = vmatprep.subr.mxu1 %v1656_v0 }
 0x67c   :  { %v1636_v6 = vsel %vm75_vm0, %v1632_v5, 0.0  ;;  %v1631_v7 = vmul.f32 %v2551_v4, %v2551_v4  ;;  %2084 = vmatpush3.msra.mxu1 %v1656_v0 }
 0x67d   :  { %1637 = vadd.xlane.f32.xlu0 %v1636_v6 }
 0x67e   :  { %v1633_v8 = vsel %vm75_vm0, %v1631_v7, 0.0 }
 0x67f   :  { %1634 = vadd.xlane.f32.xlu1 %v1633_v8 }
 0x706   :  { %v1638_v31 = vpop.xlane.xlu0 %1637 }
 0x707   :  { %v1640_v10 = vmul.f32 0.03125, %v1638_v31 }
 0x708   :  { %v1635_v11 = vpop.xlane.xlu1 %1634 }
 0x709   :  { %v1642_v12 = vadd.f32 1e-06, %v1640_v10  ;;  %v1639_v13 = vmul.f32 0.03125, %v1635_v11 }
 0x70b   :  { %2158 = vrsqrt.f32 %v1642_v12  ;;  %v1641_v14 = vadd.f32 1e-06, %v1639_v13 }
 0x70d   :  { %2160 = vrsqrt.f32 %v1641_v14 }
 0x718   :  { %v2159_v15 = vpop.eup %2158 }
 0x719   :  { %v1646_v17 = vmul.f32 %v2159_v15, %v2548_v2 }
 0x71a   :  { %v2161_v16 = vpop.eup %2160 }
 0x71b   :  { %v1645_v18 = vmul.f32 %v2161_v16, %v2551_v4  ;;  %v1655_v21 = vmul.f32 %v1910_v19, %v1646_v17 }
 0x71d   :  { %v1654_v20 = vmul.f32 %v1910_v19, %v1645_v18 }
 0x71f   :  { %2085 = vmatprep.mubr.msk.f32.mxu1 %vm75_vm0, %v1654_v20 }
 0x720   :  { %2086 = vmatmul.mubr.msk.f32.vlgmr.msra.gmra.mxu1 %vm75_vm0, %v1655_v21 }
 0x7e0   :  { %v2087_v33 = vpop.f32.mrf.mxu1 }
 0x7e1   :  { %1763 = vrot.lane.b32.xlu1 %v2087_v33, %s2263_s24  ;;  %v1744_v36 = vmul.f32 0.044715, %v2087_v33  ;;  %v1742_v49 = vmul.f32 0.5, %v2087_v33 }
 0x7e2   :  { %v1732_v34 = vpop.f32.mrf.mxu1 }
 0x7e3   :  { %1761 = vrot.lane.b32.xlu0 %v1732_v34, %s2263_s24  ;;  %v1743_v35 = vmul.f32 0.044715, %v1732_v34  ;;  %v1746_v38 = vmul.f32 %v2087_v33, %v1744_v36  ;;  %v1741_v48 = vmul.f32 0.5, %v1732_v34 }
 0x7e5   :  { %v1745_v37 = vmul.f32 %v1743_v35, %v1732_v34  ;;  %v1748_v25 = vmul.f32 %v2087_v33, %v1746_v38 }
 0x7e7   :  { %v1747_v39 = vmul.f32 %v1745_v37, %v1732_v34  ;;  %v1750_v41 = vadd.f32 %v2087_v33, %v1748_v25 }
 0x7e9   :  { %v1749_v40 = vadd.f32 %v1747_v39, %v1732_v34  ;;  %v1752_v43 = vmul.f32 0.7978846, %v1750_v41 }
 0x7eb   :  { %v1751_v42 = vmul.f32 0.7978846, %v1749_v40 }
 0x7ed   :  { %2162 = vtanh.f32 %v1751_v42 }
 0x7ee   :  { %2164 = vtanh.f32 %v1752_v43 }
 0x7fa   :  { %v2163_v44 = vpop.eup %2162 }
 0x7fb   :  { %v2165_v45 = vpop.eup %2164  ;;  %v1755_v46 = vadd.f32 1.0, %v2163_v44 }
 0x7fc   :  { %v1756_v47 = vadd.f32 1.0, %v2165_v45 }
 0x7fd   :  { %v1757_v51 = vmul.f32 %v1755_v46, %v1741_v48 }
 0x7fe   :  { %v1758_v52 = vmul.f32 %v1756_v47, %v1742_v49 }
 0x853   :  { %v1764_v50 = vpop.permute.xlu1 %1763 }
 0x854   :  { %v1768_v55 = vmul.f32 %v1764_v50, %v1758_v52 }
 0x855   :  { %v1762_v53 = vpop.permute.xlu0 %1761 }
 0x856   :  { %v1767_v54 = vmul.f32 %v1762_v53, %v1757_v51 }
 0x858   :  { %2104 = vmatprep.mubr.msk.f32.mxu0 %vm1777_vm5, %v1767_v54 }
 0x859   :  { %2105 = vmatmul.mubr.msk.f32.vlgmr.msra.gmra.mxu0 %vm1777_vm5, %v1768_v55 }
 0x919   :  { %v2106_v56 = vpop.f32.mrf.mxu0 }
 0x91a   :  { %v1860_v57 = vadd.f32 %v2106_v56, %v2548_v2 }
 0x91b   :  { %v1850_v58 = vpop.f32.mrf.mxu0 }
 0x91c   :  { %1862 = vst.msk [vmem:[#allocation8 + $0x8] sm:$0xff] %vm75_vm0, %v1860_v57  ;;  %v1859_v59 = vadd.f32 %v1850_v58, %v2551_v4 }
 0x91e   :  { %1861 = vst.msk [vmem:[#allocation8] sm:$0xff] %vm75_vm0, %v1859_v59 }
 0x91f   :  { %2237 = shalt.err (!%p2234_p5)
}
 0x920   :  { %1874 = dma.vmem_to_hbm [thread:$0]  %s1869_s20, 256, %s2610_s8, [#allocation4], %s2254_s10, %s2254_s10, %s2255_s11  }
 0x921   :  { %2250 = dma.done.wait [#allocation4], 256  }
 0x922   :  { %2251 = vsyncadd [#allocation4], 4294967040 }
 0x923   :  { %1878 = vsyncpa [#allocation3], 1 }
 0x924   :  { %1879 = vsyncpa [#allocation6], 1 }
 0x925   :  { %1880 = vsyncpa [#allocation4], 1 }

</bundles_post_ra>
